<compile_context>
chip_gen: v5e
topology: v5e:2x2
jax: 0.10.0
libtpu: 0.0.40
codegen_flags: <defaults>
</compile_context>

<pallas_src>
import functools

import jax
import jax.numpy as jnp
from jax.experimental import pallas as pl
from jax.experimental.pallas import tpu as pltpu


def _infonce_row_block_kernel(mi_ref, out_ref, *, n: int, tm: int):
    """One (tm, n) block of rows -> partial sum of per-row log terms."""
    row0 = pl.program_id(0) * tm

    m = mi_ref[...].astype(jnp.float32)                     # (tm, n), per-tile cast

    rows = jax.lax.broadcasted_iota(jnp.int32, (tm, n), 0) + row0
    cols = jax.lax.broadcasted_iota(jnp.int32, (tm, n), 1)
    diag = rows == cols

    # e_pos[i] = M[i, i]   (single masked row-sum; the only full-tile select)
    e_pos = jnp.sum(jnp.where(diag, m, 0.0), axis=-1, keepdims=True)    # (tm, 1)

    # Numerically stable row reduction (exact algebra: subtract per-row max).
    c = jnp.max(m, axis=-1, keepdims=True)                              # (tm, 1)  XLU
    row_sum = jnp.sum(jnp.exp(m - c), axis=-1, keepdims=True)           # (tm, 1)  EUP+XLU
    neg_sum = row_sum - jnp.exp(e_pos - c)                              # remove diagonal term

    # log(exp(e_pos) / sum_{j!=i} exp(M[i,j])) == e_pos - c - log(neg_sum)
    per_row = e_pos - c - jnp.log(neg_sum)                              # (tm, 1)

    # Rows past the true n (ragged / padded last tile) contribute 0.
    valid = (jax.lax.broadcasted_iota(jnp.int32, (tm, 1), 0) + row0) < n
    partial = jnp.sum(jnp.where(valid, per_row, 0.0))

    # Lane-dense partial-sum output (unmasked full-lane store).
    out_ref[...] = jnp.full((1, 1, 128), partial, dtype=jnp.float32)


def _pick_block_rows(n: int, itemsize: int) -> int:
    """Largest row tile (multiple of 8, <=512) whose per-step working set
    (double-buffered input tile + ~3 f32 temporaries) fits ~24 MiB of VMEM."""
    budget = 24 * 1024 * 1024
    per_row_bytes = n * (2 * itemsize + 3 * 4)
    tm = budget // max(per_row_bytes, 1)
    tm = max(8, min(512, int(tm)))
    return (tm // 8) * 8


def infonce_loss(mi_mat: jax.Array, block_rows=None) -> jax.Array:
    """InfoNCE loss over an (n, n) MI matrix; returns a float32 scalar."""
    assert mi_mat.ndim == 2 and mi_mat.shape[0] == mi_mat.shape[1]
    n = mi_mat.shape[0]
    itemsize = jnp.dtype(mi_mat.dtype).itemsize

    if block_rows is None:
        tm = _pick_block_rows(n, itemsize)
    else:
        tm = (max(8, int(block_rows)) // 8) * 8
    if n <= tm:
        tm = n  # single block; a full-extent block dim needs no 8-divisibility
    num_blocks = pl.cdiv(n, tm)

    kernel = functools.partial(_infonce_row_block_kernel, n=n, tm=tm)

    partials = pl.pallas_call(
        kernel,
        grid=(num_blocks,),
        in_specs=[pl.BlockSpec((tm, n), lambda i: (i, 0))],
        out_specs=pl.BlockSpec((1, 1, 128), lambda i: (i, 0, 0)),
        out_shape=jax.ShapeDtypeStruct((num_blocks, 1, 128), jnp.float32),
        compiler_params=pltpu.CompilerParams(
            dimension_semantics=("parallel",),
            vmem_limit_bytes=32 * 1024 * 1024,
        ),
    )(mi_mat)

    # Each block's partial sits (replicated) in its 128-lane row; reduce in the
    # wrapper so megacore-parallel row blocks never share an accumulator.
    return -jnp.sum(partials[:, 0, 0]) / jnp.float32(n)


def _reference(mi_mat: jax.Array) -> jax.Array:
    # Pure-JAX re-implementation of the PyTorch code (same off-diagonal view trick).
    n = mi_mat.shape[0]
    m = mi_mat.astype(jnp.float32)
    e_neg = m.reshape(-1)[1:].reshape(n - 1, n + 1)[:, :-1].reshape(n, n - 1)
    e_pos = jnp.diagonal(m)
    return -jnp.mean(jnp.log(jnp.exp(e_pos) / jnp.sum(jnp.exp(e_neg), axis=-1)))


if __name__ == "__main__":
    key = jax.random.PRNGKey(0)
    k1, k2 = jax.random.split(key)

    # Case 1: small matrix, single row block.
    n1 = 48
    mi1 = jax.random.normal(k1, (n1, n1), dtype=jnp.float32)
    loss1 = infonce_loss(mi1)
    jax.block_until_ready(loss1)
    ref1 = _reference(mi1)
    assert jnp.allclose(loss1, ref1, rtol=1e-5, atol=1e-5), (loss1, ref1)

    # Case 2: multiple row blocks + ragged last tile (200 rows, 64-row tiles).
    n2 = 200
    mi2 = jax.random.normal(k2, (n2, n2), dtype=jnp.float32)
    loss2 = infonce_loss(mi2, block_rows=64)
    jax.block_until_ready(loss2)
    ref2 = _reference(mi2)
    assert jnp.allclose(loss2, ref2, rtol=1e-5, atol=1e-5), (loss2, ref2)

    print("KERNEL_OK")
</pallas_src>

<mosaic_0001>
module attributes {stable_mosaic.version = 11 : i64} {
  func.func @_infonce_row_block_kernel(%arg0: i32, %arg1: memref<48x48xf32, #tpu.memory_space<vmem>>, %arg2: memref<1x1x128xf32, #tpu.memory_space<vmem>>) attributes {dimension_semantics = [#tpu.dimension_semantics<parallel>], iteration_bounds = array<i64: 1>, scalar_prefetch = 0 : i64, scratch_operands = 0 : i64, tpu.core_type = #tpu.core_type<tc>, window_params = [{transform_indices = @transform_0, window_bounds = array<i64: 48, 48>}, {transform_indices = @transform_1, window_bounds = array<i64: 1, 1, 128>}]} {
    %c48_i32 = arith.constant 48 : i32
    %0 = arith.muli %arg0, %c48_i32 : i32
    %c0 = arith.constant 0 : index
    %c0_0 = arith.constant 0 : index
    %1 = vector.load %arg1[%c0, %c0_0] : memref<48x48xf32, #tpu.memory_space<vmem>>, vector<48x48xf32>
    %2 = tpu.iota {dimensions = array<i32: 0>} : vector<48x48xi32>
    %3 = vector.broadcast %0 : i32 to vector<48x48xi32>
    %4 = arith.addi %2, %3 : vector<48x48xi32>
    %5 = tpu.iota {dimensions = array<i32: 1>} : vector<48x48xi32>
    %6 = arith.cmpi eq, %4, %5 : vector<48x48xi32>
    %cst = arith.constant 0.000000e+00 : f32
    %7 = vector.broadcast %cst : f32 to vector<48x48xf32>
    %8 = arith.select %6, %1, %7 : vector<48x48xi1>, vector<48x48xf32>
    %cst_1 = arith.constant dense<0.000000e+00> : vector<48xf32>
    %9 = vector.multi_reduction <add>, %8, %cst_1 [1] : vector<48x48xf32> to vector<48xf32>
    %10 = vector.shape_cast %9 : vector<48xf32> to vector<48x1xf32>
    %cst_2 = arith.constant dense<0xFF800000> : vector<48xf32>
    %11 = vector.multi_reduction <maximumf>, %1, %cst_2 [1] : vector<48x48xf32> to vector<48xf32>
    %12 = vector.shape_cast %11 : vector<48xf32> to vector<48x1xf32>
    %13 = vector.broadcast %12 : vector<48x1xf32> to vector<48x48xf32>
    %14 = arith.subf %1, %13 : vector<48x48xf32>
    %15 = math.exp %14 : vector<48x48xf32>
    %cst_3 = arith.constant dense<0.000000e+00> : vector<48xf32>
    %16 = vector.multi_reduction <add>, %15, %cst_3 [1] : vector<48x48xf32> to vector<48xf32>
    %17 = vector.shape_cast %16 : vector<48xf32> to vector<48x1xf32>
    %18 = arith.subf %10, %12 : vector<48x1xf32>
    %19 = math.exp %18 : vector<48x1xf32>
    %20 = arith.subf %17, %19 : vector<48x1xf32>
    %21 = arith.subf %10, %12 : vector<48x1xf32>
    %22 = math.log %20 : vector<48x1xf32>
    %23 = arith.subf %21, %22 : vector<48x1xf32>
    %24 = tpu.iota {dimensions = array<i32: 0>} : vector<48x1xi32>
    %25 = vector.broadcast %0 : i32 to vector<48x1xi32>
    %26 = arith.addi %24, %25 : vector<48x1xi32>
    %c48_i32_4 = arith.constant 48 : i32
    %27 = vector.broadcast %c48_i32_4 : i32 to vector<48x1xi32>
    %28 = arith.cmpi slt, %26, %27 : vector<48x1xi32>
    %cst_5 = arith.constant 0.000000e+00 : f32
    %29 = vector.broadcast %cst_5 : f32 to vector<48x1xf32>
    %30 = arith.select %28, %23, %29 : vector<48x1xi1>, vector<48x1xf32>
    %31 = vector.shape_cast %30 : vector<48x1xf32> to vector<1x48x1xf32>
    %cst_6 = arith.constant dense<0.000000e+00> : vector<1xf32>
    %32 = vector.multi_reduction <add>, %31, %cst_6 [1, 2] : vector<1x48x1xf32> to vector<1xf32>
    %33 = vector.shape_cast %32 : vector<1xf32> to vector<1x1x1xf32>
    %34 = vector.extract %33[0, 0, 0] : f32 from vector<1x1x1xf32>
    %35 = vector.broadcast %34 : f32 to vector<1x1x128xf32>
    %c0_7 = arith.constant 0 : index
    %c0_8 = arith.constant 0 : index
    %c0_9 = arith.constant 0 : index
    %36 = vector.load %arg2[%c0_7, %c0_8, %c0_9] : memref<1x1x128xf32, #tpu.memory_space<vmem>>, vector<1x1x128xf32>
    tpu.vector_store %arg2[%c0_7, %c0_8, %c0_9], %35 {strides = array<i32>} : memref<1x1x128xf32, #tpu.memory_space<vmem>>, vector<1x1x128xf32>,
    return
  }
  func.func @transform_0(%arg0: i32) -> (i32, i32) {
    %c0_i32 = arith.constant 0 : i32
    %c0_i32_0 = arith.constant 0 : i32
    return %arg0, %c0_i32 : i32, i32
  }
  func.func @transform_1(%arg0: i32) -> (i32, i32, i32) {
    %c0_i32 = arith.constant 0 : i32
    %c0_i32_0 = arith.constant 0 : i32
    %c0_i32_1 = arith.constant 0 : i32
    return %arg0, %c0_i32, %c0_i32_0 : i32, i32, i32
  }
}

</mosaic_0001>

<bundles_post_ra>
// kernel: tpu_custom_call.1
= control target key start
LH: loop header
LB: loop body
LE: loop exit
PB: predicated region body
PF: predicated region fallthrough
CT: control target
= control target key end

     0   :  { %6 = vsyncpa [#allocation3], 0  ;;  %s382_s0 = inlined_call_operand.hbm [shape: f32[48,48], index: 0, kind: input, shape index: {}]   ;;  %s383_s1 = inlined_call_operand.hbm [shape: f32[1,1,128], index: 1, kind: output, shape index: {}]  }
   0x1   :  { %7 = vsyncpa [#allocation4], 0  ;;  %s12_s8 = sshll.u32 %s382_s0, 4  ;;  %s321_s9 = smov [#allocation2]   ;;  %s13_s8 = int_to_ptr.hbm [resolvable:$true] %s12_s8 }
   0x2   :  { %s14_s10 = sshll.u32 %s321_s9, 4  ;;  %s322_s11 = smov 128   ;;  %s15_s10 = int_to_ptr.vmem [resolvable:$true] %s14_s10 }
   0x3   :  { %s323_s12 = smov 8  }
   0x4   :  { %20 = dma.hbm_to_vmem [thread:$0]  %s13_s8, 768, %s15_s10, [#allocation3], %s322_s11, %s322_s11, %s323_s12  }
   0x5   :  { %317 = dma.done.wait [#allocation3], 768  }
   0x6   :  { %318 = vsyncadd [#allocation3], 4294966528  ;;  %v32_v0 = vlaneseq  ;;  %vm60_vm0 = vcmask 392192   ;;  %v338_v1 = vld [vmem:[#allocation2 + $0x20] sm:$0xff]  ;;  %v28_v2 = vld [vmem:[#allocation2 + $0x10] sm:$0xff]  ;;  %vm187_vm7 = vcmask 7168  }
   0x7   :  { %v26_v3 = vld [vmem:[#allocation2] sm:$0xff]  ;;  %v91_v4 = vsel %vm60_vm0, %v338_v1, -inf  ;;  %v85_v5 = vsel %vm60_vm0, %v28_v2, -inf  ;;  %v31_v8 = vld [vmem:[#allocation2 + $0x28] sm:$0xff]  ;;  %v29_v9 = vld [vmem:[#allocation2 + $0x18] sm:$0xff]  ;;  %s324_s0 = smov [#allocation5]  }
   0x8   :  { %v79_v6 = vsel %vm60_vm0, %v26_v3, -inf  ;;  %v33_v7 = vshrl.u32 %v32_v0, 7  ;;  %92 = vmax.xlane.f32.xlu2 %v91_v4  ;;  %86 = vmax.xlane.f32.xlu1 %v85_v5  ;;  %v27_v10 = vld [vmem:[#allocation2 + $0x8] sm:$0xff]  ;;  %v47_v12 = vand.u32 127, %v32_v0  ;;  %v94_v14 = vsel %vm60_vm0, %v31_v8, -inf  ;;  %s215_s13 = sshll.u32 %s324_s0, 4  ;;  %s216_s13 = int_to_ptr.vmem [resolvable:$true] %s215_s13 }
   0x9   :  { %80 = vmax.xlane.f32.xlu0 %v79_v6  ;;  %v88_v15 = vsel %vm60_vm0, %v29_v9, -inf  ;;  %v82_v16 = vsel %vm60_vm0, %v27_v10, -inf  ;;  %s217_s16 = sshll.u32 %s383_s1, 4  ;;  %s218_s16 = int_to_ptr.hbm [resolvable:$true] %s217_s16 }
   0xa   :  { %v35_v11 = vadd.s32 16, %v33_v7  ;;  %v34_v13 = vadd.s32 8, %v33_v7  ;;  %vm48_vm3 = vcmp.eq.s32.totalorder %v33_v7, %v47_v12  ;;  %v38_v20 = vadd.s32 40, %v33_v7 }
   0xb   :  { %v54_v19 = vsel %vm48_vm3, %v26_v3, 0.0  ;;  %v37_v21 = vadd.s32 32, %v33_v7  ;;  %v36_v22 = vadd.s32 24, %v33_v7 }
   0xc   :  { %vm50_vm1 = vcmp.eq.s32.totalorder %v35_v11, %v47_v12  ;;  %vm49_vm2 = vcmp.eq.s32.totalorder %v34_v13, %v47_v12  ;;  %v61_v25 = vsel %vm60_vm0, %v54_v19, 0.0  ;;  %vm53_vm4 = vcmp.eq.s32.totalorder %v38_v20, %v47_v12 }
   0xd   :  { %v56_v17 = vsel %vm50_vm1, %v28_v2, 0.0  ;;  %v55_v18 = vsel %vm49_vm2, %v27_v10, 0.0  ;;  %vm52_vm5 = vcmp.eq.s32.totalorder %v37_v21, %v47_v12  ;;  %vm51_vm6 = vcmp.eq.s32.totalorder %v36_v22, %v47_v12 }
   0xe   :  { %v67_v23 = vsel %vm60_vm0, %v56_v17, 0.0  ;;  %v64_v24 = vsel %vm60_vm0, %v55_v18, 0.0  ;;  %v59_v26 = vsel %vm53_vm4, %v31_v8, 0.0  ;;  %v58_v27 = vsel %vm52_vm5, %v338_v1, 0.0 }
   0xf   :  { %v57_v28 = vsel %vm51_vm6, %v29_v9, 0.0  ;;  %v76_v29 = vsel %vm60_vm0, %v59_v26, 0.0  ;;  %v73_v30 = vsel %vm60_vm0, %v58_v27, 0.0 }
  0x10   :  { %95 = vmax.xlane.f32.xlu2 %v94_v14  ;;  %89 = vmax.xlane.f32.xlu1 %v88_v15  ;;  %v70_v31 = vsel %vm60_vm0, %v57_v28, 0.0 }
  0x11   :  { %83 = vmax.xlane.f32.xlu0 %v82_v16 }
  0x18   :  { %68 = vadd.xlane.f32.xlu2 %v67_v23  ;;  %65 = vadd.xlane.f32.xlu1 %v64_v24 }
  0x19   :  { %62 = vadd.xlane.f32.xlu0 %v61_v25 }
  0x20   :  { %77 = vadd.xlane.f32.xlu2 %v76_v29  ;;  %74 = vadd.xlane.f32.xlu1 %v73_v30 }
  0x21   :  { %71 = vadd.xlane.f32.xlu0 %v70_v31 }
  0x7b   :  { %v354_v32 = vpop.xlane.xlu2 %92  ;;  %v87_v33 = vpop.xlane.xlu1 %86 }
  0x7c   :  { %v99_v34 = vsub.f32 %v28_v2, %v87_v33  ;;  %v81_v35 = vpop.xlane.xlu0 %80  ;;  %v101_v50 = vsub.f32 %v338_v1, %v354_v32 }
  0x7d   :  { %v97_v36 = vsub.f32 %v26_v3, %v81_v35 }
  0x7e   :  { %v107_v37 = vmul.f32 1.442695, %v99_v34  ;;  %v111_v53 = vmul.f32 1.442695, %v101_v50 }
  0x7f   :  { %v103_v38 = vmul.f32 1.442695, %v97_v36 }
  0x80   :  { %233 = vpow2.f32 %v107_v37 }
  0x81   :  { %235 = vpow2.f32 %v103_v38 }
  0x83   :  { %v96_v39 = vpop.xlane.xlu2 %95  ;;  %v90_v40 = vpop.xlane.xlu1 %89 }
  0x84   :  { %v102_v41 = vsub.f32 %v31_v8, %v96_v39  ;;  %v100_v42 = vsub.f32 %v29_v9, %v90_v40  ;;  %v84_v43 = vpop.xlane.xlu0 %83 }
  0x85   :  { %v98_v44 = vsub.f32 %v27_v10, %v84_v43 }
  0x86   :  { %v113_v45 = vmul.f32 1.442695, %v102_v41  ;;  %v109_v46 = vmul.f32 1.442695, %v100_v42  ;;  %v234_v47 = vpop.eup %233 }
  0x87   :  { %v105_v48 = vmul.f32 1.442695, %v98_v44  ;;  %v236_v49 = vpop.eup %235  ;;  %v121_v51 = vsel %vm60_vm0, %v234_v47, 0.0 }
  0x88   :  { %237 = vpow2.f32 %v113_v45  ;;  %122 = vadd.xlane.f32.xlu2 %v121_v51  ;;  %v115_v52 = vsel %vm60_vm0, %v236_v49, 0.0 }
  0x89   :  { %239 = vpow2.f32 %v109_v46  ;;  %116 = vadd.xlane.f32.xlu0 %v115_v52 }
  0x8a   :  { %241 = vpow2.f32 %v105_v48 }
  0x8b   :  { %243 = vpow2.f32 %v111_v53  ;;  %v69_v62 = vpop.xlane.xlu2 %68  ;;  %v66_v2 = vpop.xlane.xlu1 %65 }
  0x8c   :  { %v63_v63 = vpop.xlane.xlu0 %62  ;;  %v364_v1 = vsub.f32 %v69_v62, %v87_v33  ;;  %v134_v7 = vsub.f32 %v66_v2, %v84_v43 }
  0x8d   :  { %v133_v0 = vsub.f32 %v63_v63, %v81_v35 }
  0x8e   :  { %v238_v54 = vpop.eup %237  ;;  %v143_v6 = vmul.f32 1.442695, %v364_v1  ;;  %v141_v10 = vmul.f32 1.442695, %v134_v7 }
  0x8f   :  { %v240_v55 = vpop.eup %239  ;;  %v130_v56 = vsel %vm60_vm0, %v238_v54, 0.0  ;;  %v139_v3 = vmul.f32 1.442695, %v133_v0 }
  0x90   :  { %v242_v57 = vpop.eup %241  ;;  %v124_v58 = vsel %vm60_vm0, %v240_v55, 0.0  ;;  %131 = vadd.xlane.f32.xlu2 %v130_v56 }
  0x91   :  { %v118_v59 = vsel %vm60_vm0, %v242_v57, 0.0  ;;  %125 = vadd.xlane.f32.xlu0 %v124_v58  ;;  %v244_v60 = vpop.eup %243  ;;  %245 = vpow2.f32 %v139_v3 }
  0x92   :  { %119 = vadd.xlane.f32.xlu1 %v118_v59  ;;  %v127_v61 = vsel %vm60_vm0, %v244_v60, 0.0  ;;  %247 = vpow2.f32 %v143_v6 }
  0x93   :  { %v78_v4 = vpop.xlane.xlu2 %77  ;;  %v75_v12 = vpop.xlane.xlu1 %74  ;;  %249 = vpow2.f32 %v141_v10 }
  0x94   :  { %v72_v5 = vpop.xlane.xlu0 %71  ;;  %v367_v9 = vsub.f32 %v78_v4, %v96_v39  ;;  %v137_v19 = vsub.f32 %v75_v12, %v354_v32 }
  0x95   :  { %v136_v8 = vsub.f32 %v72_v5, %v90_v40 }
  0x96   :  { %v149_v15 = vmul.f32 1.442695, %v367_v9  ;;  %v147_v21 = vmul.f32 1.442695, %v137_v19 }
  0x97   :  { %v145_v11 = vmul.f32 1.442695, %v136_v8  ;;  %v246_v14 = vpop.eup %245 }
  0x98   :  { %v248_v18 = vpop.eup %247 }
  0x99   :  { %251 = vpow2.f32 %v145_v11  ;;  %v250_v22 = vpop.eup %249 }
  0x9a   :  { %128 = vadd.xlane.f32.xlu1 %v127_v61  ;;  %253 = vpow2.f32 %v149_v15 }
  0x9f   :  { %v252_v24 = vpop.eup %251 }
  0xa0   :  { %v254_v29 = vpop.eup %253 }
  0xfb   :  { %v123_v13 = vpop.xlane.xlu2 %122 }
  0xfc   :  { %v117_v16 = vpop.xlane.xlu0 %116  ;;  %v153_v20 = vsub.f32 %v123_v13, %v248_v18 }
  0xfd   :  { %v151_v17 = vsub.f32 %v117_v16, %v246_v14 }
  0xff   :  { %255 = vlog2.f32 %v151_v17 }
 0x100   :  { %257 = vlog2.f32 %v153_v20 }
 0x101   :  { %259 = vpow2.f32 %v147_v21 }
 0x103   :  { %v132_v23 = vpop.xlane.xlu2 %131 }
 0x104   :  { %v126_v26 = vpop.xlane.xlu0 %125  ;;  %v156_v31 = vsub.f32 %v132_v23, %v254_v29 }
 0x105   :  { %v120_v25 = vpop.xlane.xlu1 %119  ;;  %v154_v28 = vsub.f32 %v126_v26, %v252_v24  ;;  %v256_v30 = vpop.eup %255 }
 0x106   :  { %v152_v27 = vsub.f32 %v120_v25, %v250_v22  ;;  %v258_v32 = vpop.eup %257  ;;  %v158_v33 = vmul.f32 0.6931472, %v256_v30 }
 0x107   :  { %v260_v34 = vpop.eup %259  ;;  %v162_v35 = vmul.f32 0.6931472, %v258_v32 }
 0x108   :  { %261 = vlog2.f32 %v152_v27  ;;  %v169_v40 = vsub.f32 %v133_v0, %v158_v33 }
 0x109   :  { %263 = vlog2.f32 %v154_v28  ;;  %v171_v43 = vsub.f32 %v364_v1, %v162_v35 }
 0x10a   :  { %265 = vlog2.f32 %v156_v31  ;;  %v188_v46 = vsel %vm187_vm7, %v169_v40, 0.0 }
 0x10b   :  { %v191_v50 = vsel %vm187_vm7, %v171_v43, 0.0 }
 0x10d   :  { %v129_v36 = vpop.xlane.xlu1 %128 }
 0x10e   :  { %v262_v37 = vpop.eup %261  ;;  %v155_v38 = vsub.f32 %v129_v36, %v260_v34 }
 0x10f   :  { %v264_v39 = vpop.eup %263  ;;  %v160_v41 = vmul.f32 0.6931472, %v262_v37 }
 0x110   :  { %v164_v42 = vmul.f32 0.6931472, %v264_v39  ;;  %267 = vlog2.f32 %v155_v38  ;;  %v266_v45 = vpop.eup %265 }
 0x111   :  { %v170_v44 = vsub.f32 %v134_v7, %v160_v41  ;;  %v168_v51 = vmul.f32 0.6931472, %v266_v45 }
 0x112   :  { %v172_v48 = vsub.f32 %v136_v8, %v164_v42 }
 0x113   :  { %v189_v47 = vsel %vm187_vm7, %v170_v44, 0.0  ;;  %v174_v58 = vsub.f32 %v367_v9, %v168_v51 }
 0x114   :  { %v190_v49 = vadd.f32 %v189_v47, %v188_v46  ;;  %v193_v55 = vsel %vm187_vm7, %v172_v48, 0.0 }
 0x115   :  { %v197_v61 = vsel %vm187_vm7, %v174_v58, 0.0 }
 0x116   :  { %v268_v52 = vpop.eup %267  ;;  %v192_v53 = vadd.f32 %v191_v50, %v190_v49 }
 0x117   :  { %v166_v54 = vmul.f32 0.6931472, %v268_v52 }
 0x118   :  { %v194_v56 = vadd.f32 %v193_v55, %v192_v53 }
 0x119   :  { %v173_v57 = vsub.f32 %v137_v19, %v166_v54 }
 0x11b   :  { %v195_v59 = vsel %vm187_vm7, %v173_v57, 0.0 }
 0x11c   :  { %v196_v60 = vadd.f32 %v195_v59, %v194_v56 }
 0x11e   :  { %v198_v62 = vadd.f32 %v197_v61, %v196_v60 }
 0x120   :  { %199 = vadd.xlane.f32.xlu0 %v198_v62 }
 0x193   :  { %v200_v63 = vpop.xlane.xlu0 %199 }
 0x194   :  { %v201_v0 = vrot.slane %v200_v63, 4 }
 0x196   :  { %v202_v1 = vadd.f32 %v201_v0, %v200_v63 }
 0x198   :  { %v203_v2 = vrot.slane %v202_v1, 2 }
 0x19a   :  { %v204_v3 = vadd.f32 %v203_v2, %v202_v1 }
 0x19c   :  { %v205_v4 = vrot.slane %v204_v3, 1 }
 0x19e   :  { %v206_v5 = vadd.f32 %v205_v4, %v204_v3 }
 0x1a0   :  { %227 = vpush %v206_v5 }
 0x1d1   :  { %s228_s17 = spop %227 }
 0x1d2   :  { %v208_v6 = vstv %s228_s17 }
 0x1d3   :  { %209 = vst [vmem:[#allocation5] sm:$0x1] %v208_v6 }
 0x1d4   :  { %220 = dma.vmem_to_hbm [thread:$0]  %s216_s13, 16, %s218_s16, [#allocation4]  }
 0x1d5   :  { %319 = dma.done.wait [#allocation4], 16  }
 0x1d6   :  { %320 = vsyncadd [#allocation4], 4294967280 }
 0x1d7   :  { %225 = vsyncpa [#allocation3], 1 }
 0x1d8   :  { %226 = vsyncpa [#allocation4], 1 }

</bundles_post_ra>
